<compile_context>
chip_gen: v7x
topology: tpu7x:2x2x1
jax: 0.10.0
libtpu: 0.0.40
codegen_flags: <defaults>
</compile_context>

<pallas_src>
import jax
import jax.numpy as jnp
from jax.experimental import pallas as pl
from jax.experimental.pallas import tpu as pltpu

context_length = 8
emb_dim = 32
num_heads = 6
head_size = 8          # constructor arg; chosen freely for this synthetic kernel


def mha_kernel(x_ref, wqkv_ref, wp_ref, bp_ref, o_ref):
    # x_ref block: (S, E) with S = (batch elems this step) * T; tokens of
    # different batch elements are stacked along sublanes.
    S, E = x_ref.shape
    H = num_heads
    hs = head_size
    T = context_length
    scale = hs ** (-0.5)

    x = x_ref[...]                                            # (S, E) f32

    # --- fused QKV projection: H batched matmuls; q|k|v share the lane dim ---
    xb = jnp.broadcast_to(x[None], (H, S, E))                 # (H, S, E)
    qkv = jnp.einsum('hse,hed->hsd', xb, wqkv_ref[...],
                     preferred_element_type=jnp.float32)      # (H, S, 3*hs)
    q = qkv[..., 0 * hs:1 * hs] * scale                       # (H, S, hs)
    k = qkv[..., 1 * hs:2 * hs]                               # (H, S, hs)
    v = qkv[..., 2 * hs:3 * hs]                               # (H, S, hs)

    # --- scores + (block-diagonal) causal mask + softmax (batched over heads) -
    s = jnp.einsum('hqd,hkd->hqk', q, k,
                   preferred_element_type=jnp.float32)        # (H, S, S)

    row = jax.lax.broadcasted_iota(jnp.int32, (S, S), 0)
    col = jax.lax.broadcasted_iota(jnp.int32, (S, S), 1)
    allowed = row >= col                                      # causal
    if S != T:  # multiple sequences sublane-stacked in this step
        if (T & (T - 1)) == 0:         # T power of two: cheap bitwise block id
            same_seq = (row & ~(T - 1)) == (col & ~(T - 1))
        else:
            same_seq = (row // T) == (col // T)
        allowed = allowed & same_seq   # no attention across batch elements

    neg = jnp.float32(jnp.finfo(jnp.float32).min)   # finite: avoids inf - inf
    s = jnp.where(allowed[None], s, neg)
    s = s - jnp.max(s, axis=-1, keepdims=True)
    p = jnp.exp(s)
    denom = jnp.sum(p, axis=-1, keepdims=True)
    p = p * pl.reciprocal(denom, approx=True)       # EUP slot, no VPU divide

    # --- attention output + projection (no concat: contract per head, sum) ---
    av = jnp.einsum('hqk,hkd->hqd', p, v,
                    preferred_element_type=jnp.float32)           # (H, S, hs)
    per_head = jnp.einsum('hsd,hde->hse', av, wp_ref[...],
                          preferred_element_type=jnp.float32)     # (H, S, E)
    o_ref[...] = jnp.sum(per_head, axis=0) + bp_ref[...]          # (S, E)


def _batch_block(batch):
    """Batch elements per grid step.

    v7x has 2 TensorCores/chip -> split the batch over a 2-wide parallel grid
    axis. Single-TC chips (v5e/v6e): the grid is a serial loop, so process the
    whole batch in ONE step to avoid per-step pipeline overhead (~0.35 us).
    """
    try:
        kind = jax.devices()[0].device_kind.lower()
    except Exception:
        kind = ""
    if (("v7" in kind) or ("tpu7" in kind)) and batch % 2 == 0:
        return batch // 2
    return batch


def multi_head_attention(x, wq, wk, wv, wp, bp):
    """x: (B, T, E); wq/wk/wv: (H, E, hs); wp: (H*hs, E); bp: (1, E)."""
    B, T, E = x.shape
    H, hs = num_heads, head_size

    # Wrapper-side one-time weight prep: fuse (q|k|v) per head along the lane
    # dim, split the projection weight per head.
    wqkv = jnp.concatenate([wq, wk, wv], axis=-1)    # (H, E, 3*hs)
    wp_r = wp.reshape(H, hs, E)                      # (H, hs, E)

    bblk = _batch_block(B)                           # batch elems per grid step
    S = bblk * T
    x2d = x.reshape(B * T, E)                        # sublane-stacked tokens

    out2d = pl.pallas_call(
        mha_kernel,
        out_shape=jax.ShapeDtypeStruct((B * T, E), jnp.float32),
        grid=(B // bblk,),
        in_specs=[
            pl.BlockSpec((S, E), lambda i: (i, 0)),          # activations
            pl.BlockSpec(wqkv.shape, lambda i: (0, 0, 0)),   # fused Wqkv (H,E,3hs)
            pl.BlockSpec(wp_r.shape, lambda i: (0, 0, 0)),   # proj weight (H,hs,E)
            pl.BlockSpec(bp.shape, lambda i: (0, 0)),        # proj bias (1, E)
        ],
        out_specs=pl.BlockSpec((S, E), lambda i: (i, 0)),
        compiler_params=pltpu.CompilerParams(dimension_semantics=("parallel",)),
    )(x2d, wqkv, wp_r, bp)
    return out2d.reshape(B, T, E)


def reference(x, wq, wk, wv, wp, bp):
    # Pure-JAX reference (eval mode, dropout = identity).
    B, T, E = x.shape
    causal = jnp.tril(jnp.ones((T, T), dtype=bool))
    outs = []
    for h in range(num_heads):
        q = x @ wq[h]
        k = x @ wk[h]
        v = x @ wv[h]
        s = (q @ jnp.swapaxes(k, -2, -1)) * head_size ** (-0.5)
        s = jnp.where(causal, s, -jnp.inf)
        p = jax.nn.softmax(s, axis=-1)
        outs.append(p @ v)
    cat = jnp.concatenate(outs, axis=-1)
    return cat @ wp + bp[0]


if __name__ == "__main__":
    key = jax.random.PRNGKey(0)
    kx, kq, kk, kv, kp, kb = jax.random.split(key, 6)

    B, T = 2, context_length
    x = jax.random.normal(kx, (B, T, emb_dim), dtype=jnp.float32)

    # Deterministic parameter init (PyTorch Linear stores (out, in); we store
    # the transposed (in, out) layout directly and matmul from the right).
    lin_scale = 1.0 / jnp.sqrt(emb_dim)
    wq = jax.random.uniform(kq, (num_heads, emb_dim, head_size), jnp.float32,
                            -lin_scale, lin_scale)
    wk = jax.random.uniform(kk, (num_heads, emb_dim, head_size), jnp.float32,
                            -lin_scale, lin_scale)
    wv = jax.random.uniform(kv, (num_heads, emb_dim, head_size), jnp.float32,
                            -lin_scale, lin_scale)
    proj_scale = 1.0 / jnp.sqrt(num_heads * head_size)
    wp = jax.random.uniform(kp, (num_heads * head_size, emb_dim), jnp.float32,
                            -proj_scale, proj_scale)
    bp = jax.random.uniform(kb, (1, emb_dim), jnp.float32, -proj_scale, proj_scale)

    out = multi_head_attention(x, wq, wk, wv, wp, bp)
    out = jax.block_until_ready(out)

    ref = reference(x, wq, wk, wv, wp, bp)
    assert out.shape == (B, T, emb_dim)
    # approx reciprocal (EUP) in the softmax -> allow ~1e-3-level relative error.
    assert jnp.allclose(out, ref, atol=2e-3, rtol=2e-3), "mismatch vs JAX reference"

    print("KERNEL_OK")
</pallas_src>

<mosaic_0001>
module attributes {stable_mosaic.version = 11 : i64} {
  func.func @mha_kernel(%arg0: i32, %arg1: memref<16x32xf32, #tpu.memory_space<vmem>>, %arg2: memref<6x32x24xf32, #tpu.memory_space<vmem>>, %arg3: memref<6x8x32xf32, #tpu.memory_space<vmem>>, %arg4: memref<1x32xf32, #tpu.memory_space<vmem>>, %arg5: memref<16x32xf32, #tpu.memory_space<vmem>>) attributes {dimension_semantics = [#tpu.dimension_semantics<parallel>], iteration_bounds = array<i64: 1>, scalar_prefetch = 0 : i64, scratch_operands = 0 : i64, tpu.core_type = #tpu.core_type<tc>, window_params = [{transform_indices = @transform_0, window_bounds = array<i64: 16, 32>}, {pipeline_mode = #tpu.pipeline_mode<synchronous>, transform_indices = @transform_1, window_bounds = array<i64: 6, 32, 24>}, {pipeline_mode = #tpu.pipeline_mode<synchronous>, transform_indices = @transform_2, window_bounds = array<i64: 6, 8, 32>}, {pipeline_mode = #tpu.pipeline_mode<synchronous>, transform_indices = @transform_3, window_bounds = array<i64: 1, 32>}, {transform_indices = @transform_4, window_bounds = array<i64: 16, 32>}]} {
    %c0 = arith.constant 0 : index
    %c0_0 = arith.constant 0 : index
    %0 = vector.load %arg1[%c0, %c0_0] : memref<16x32xf32, #tpu.memory_space<vmem>>, vector<16x32xf32>
    %1 = vector.shape_cast %0 : vector<16x32xf32> to vector<1x16x32xf32>
    %2 = vector.shape_cast %1 : vector<1x16x32xf32> to vector<1x16x32xf32>
    %3 = vector.broadcast %2 : vector<1x16x32xf32> to vector<6x16x32xf32>
    %c0_1 = arith.constant 0 : index
    %c0_2 = arith.constant 0 : index
    %c0_3 = arith.constant 0 : index
    %4 = vector.load %arg2[%c0_1, %c0_2, %c0_3] : memref<6x32x24xf32, #tpu.memory_space<vmem>>, vector<6x32x24xf32>
    "tpu.trace_start"() <{level = 10 : i32, message = "hse,hed->hsd"}> : () -> ()
    %cst = arith.constant dense<0.000000e+00> : vector<6x16x24xf32>
    %5 = tpu.matmul %3, %4, %cst {dimension_numbers = #tpu.dot_dimension_numbers<[2], [1], [1], [2], [0, 0, 0, 1, 1, 2], [0], [0]>} : vector<6x16x32xf32>, vector<6x32x24xf32>, vector<6x16x24xf32> -> vector<6x16x24xf32>
    "tpu.trace_stop"() : () -> ()
    %6 = vector.extract_strided_slice %5 {offsets = [0, 0, 0], sizes = [6, 16, 8], strides = [1, 1, 1]} : vector<6x16x24xf32> to vector<6x16x8xf32>
    %cst_4 = arith.constant 0.353553385 : f32
    %7 = vector.broadcast %cst_4 : f32 to vector<6x16x8xf32>
    %8 = arith.mulf %6, %7 : vector<6x16x8xf32>
    %9 = vector.extract_strided_slice %5 {offsets = [0, 0, 8], sizes = [6, 16, 8], strides = [1, 1, 1]} : vector<6x16x24xf32> to vector<6x16x8xf32>
    %10 = vector.extract_strided_slice %5 {offsets = [0, 0, 16], sizes = [6, 16, 8], strides = [1, 1, 1]} : vector<6x16x24xf32> to vector<6x16x8xf32>
    "tpu.trace_start"() <{level = 10 : i32, message = "hqd,hkd->hqk"}> : () -> ()
    %cst_5 = arith.constant dense<0.000000e+00> : vector<6x16x16xf32>
    %11 = tpu.matmul %8, %9, %cst_5 {dimension_numbers = #tpu.dot_dimension_numbers<[2], [2], [1], [1], [0, 0, 0, 1, 1, 1], [0], [0]>} : vector<6x16x8xf32>, vector<6x16x8xf32>, vector<6x16x16xf32> -> vector<6x16x16xf32>
    "tpu.trace_stop"() : () -> ()
    %12 = tpu.iota {dimensions = array<i32: 0>} : vector<16x16xi32>
    %13 = tpu.iota {dimensions = array<i32: 1>} : vector<16x16xi32>
    %14 = arith.cmpi sge, %12, %13 : vector<16x16xi32>
    %c-8_i32 = arith.constant -8 : i32
    %15 = vector.broadcast %c-8_i32 : i32 to vector<16x16xi32>
    %16 = arith.andi %12, %15 : vector<16x16xi32>
    %c-8_i32_6 = arith.constant -8 : i32
    %17 = vector.broadcast %c-8_i32_6 : i32 to vector<16x16xi32>
    %18 = arith.andi %13, %17 : vector<16x16xi32>
    %19 = arith.cmpi eq, %16, %18 : vector<16x16xi32>
    %20 = arith.andi %14, %19 : vector<16x16xi1>
    %21 = vector.shape_cast %20 : vector<16x16xi1> to vector<1x16x16xi1>
    %cst_7 = arith.constant -3.40282347E+38 : f32
    %22 = vector.shape_cast %21 : vector<1x16x16xi1> to vector<1x16x16xi1>
    %23 = vector.broadcast %22 : vector<1x16x16xi1> to vector<6x16x16xi1>
    %24 = vector.broadcast %cst_7 : f32 to vector<6x16x16xf32>
    %25 = arith.select %23, %11, %24 : vector<6x16x16xi1>, vector<6x16x16xf32>
    %cst_8 = arith.constant dense<0xFF800000> : vector<6x16xf32>
    %26 = vector.multi_reduction <maximumf>, %25, %cst_8 [2] : vector<6x16x16xf32> to vector<6x16xf32>
    %27 = vector.shape_cast %26 : vector<6x16xf32> to vector<6x16x1xf32>
    %28 = vector.broadcast %27 : vector<6x16x1xf32> to vector<6x16x16xf32>
    %29 = arith.subf %25, %28 : vector<6x16x16xf32>
    %30 = math.exp %29 : vector<6x16x16xf32>
    %cst_9 = arith.constant dense<0.000000e+00> : vector<6x16xf32>
    %31 = vector.multi_reduction <add>, %30, %cst_9 [2] : vector<6x16x16xf32> to vector<6x16xf32>
    %32 = vector.shape_cast %31 : vector<6x16xf32> to vector<6x16x1xf32>
    %33 = tpu.reciprocal %32 {approx = true} : vector<6x16x1xf32> -> vector<6x16x1xf32>
    %34 = vector.broadcast %33 : vector<6x16x1xf32> to vector<6x16x16xf32>
    %35 = arith.mulf %30, %34 : vector<6x16x16xf32>
    "tpu.trace_start"() <{level = 10 : i32, message = "hqk,hkd->hqd"}> : () -> ()
    %cst_10 = arith.constant dense<0.000000e+00> : vector<6x16x8xf32>
    %36 = tpu.matmul %35, %10, %cst_10 {dimension_numbers = #tpu.dot_dimension_numbers<[2], [1], [1], [2], [0, 0, 0, 1, 1, 2], [0], [0]>} : vector<6x16x16xf32>, vector<6x16x8xf32>, vector<6x16x8xf32> -> vector<6x16x8xf32>
    "tpu.trace_stop"() : () -> ()
    %c0_11 = arith.constant 0 : index
    %c0_12 = arith.constant 0 : index
    %c0_13 = arith.constant 0 : index
    %37 = vector.load %arg3[%c0_11, %c0_12, %c0_13] : memref<6x8x32xf32, #tpu.memory_space<vmem>>, vector<6x8x32xf32>
    "tpu.trace_start"() <{level = 10 : i32, message = "hsd,hde->hse"}> : () -> ()
    %cst_14 = arith.constant dense<0.000000e+00> : vector<6x16x32xf32>
    %38 = tpu.matmul %36, %37, %cst_14 {dimension_numbers = #tpu.dot_dimension_numbers<[2], [1], [1], [2], [0, 0, 0, 1, 1, 2], [0], [0]>} : vector<6x16x8xf32>, vector<6x8x32xf32>, vector<6x16x32xf32> -> vector<6x16x32xf32>
    "tpu.trace_stop"() : () -> ()
    %cst_15 = arith.constant dense<0.000000e+00> : vector<16x32xf32>
    %39 = vector.multi_reduction <add>, %38, %cst_15 [0] : vector<6x16x32xf32> to vector<16x32xf32>
    %c0_16 = arith.constant 0 : index
    %c0_17 = arith.constant 0 : index
    %40 = vector.load %arg4[%c0_16, %c0_17] : memref<1x32xf32, #tpu.memory_space<vmem>>, vector<1x32xf32>
    %41 = vector.broadcast %40 : vector<1x32xf32> to vector<16x32xf32>
    %42 = arith.addf %39, %41 : vector<16x32xf32>
    %c0_18 = arith.constant 0 : index
    %c0_19 = arith.constant 0 : index
    %43 = vector.load %arg5[%c0_18, %c0_19] : memref<16x32xf32, #tpu.memory_space<vmem>>, vector<16x32xf32>
    tpu.vector_store %arg5[%c0_18, %c0_19], %42 {strides = array<i32>} : memref<16x32xf32, #tpu.memory_space<vmem>>, vector<16x32xf32>,
    return
  }
  func.func @transform_0(%arg0: i32) -> (i32, i32) {
    %c0_i32 = arith.constant 0 : i32
    %c0_i32_0 = arith.constant 0 : i32
    return %arg0, %c0_i32 : i32, i32
  }
  func.func @transform_1(%arg0: i32) -> (i32, i32, i32) {
    %c0_i32 = arith.constant 0 : i32
    %c0_i32_0 = arith.constant 0 : i32
    %c0_i32_1 = arith.constant 0 : i32
    %c0_i32_2 = arith.constant 0 : i32
    return %c0_i32, %c0_i32_0, %c0_i32_1 : i32, i32, i32
  }
  func.func @transform_2(%arg0: i32) -> (i32, i32, i32) {
    %c0_i32 = arith.constant 0 : i32
    %c0_i32_0 = arith.constant 0 : i32
    %c0_i32_1 = arith.constant 0 : i32
    %c0_i32_2 = arith.constant 0 : i32
    return %c0_i32, %c0_i32_0, %c0_i32_1 : i32, i32, i32
  }
  func.func @transform_3(%arg0: i32) -> (i32, i32) {
    %c0_i32 = arith.constant 0 : i32
    %c0_i32_0 = arith.constant 0 : i32
    %c0_i32_1 = arith.constant 0 : i32
    return %c0_i32, %c0_i32_0 : i32, i32
  }
  func.func @transform_4(%arg0: i32) -> (i32, i32) {
    %c0_i32 = arith.constant 0 : i32
    %c0_i32_0 = arith.constant 0 : i32
    return %arg0, %c0_i32 : i32, i32
  }
}

</mosaic_0001>

<bundles_post_ra>
// kernel: tpu_custom_call.1
= control target key start
LH: loop header
LB: loop body
LE: loop exit
PB: predicated region body
PF: predicated region fallthrough
CT: control target
= control target key end

     0   :  { %vm44_vm0 = vcmask 261120   ;;  %s3265_s0 = inlined_call_operand.vmem [shape: f32[16,32], index: 0, kind: input, shape index: {}]   ;;  %s3266_s1 = inlined_call_operand.vmem [shape: f32[6,32,24], index: 1, kind: input, shape index: {}]   ;;  %s3267_s2 = inlined_call_operand.vmem [shape: f32[6,8,32], index: 2, kind: input, shape index: {}]   ;;  %s3268_s3 = inlined_call_operand.vmem [shape: f32[1,32], index: 3, kind: input, shape index: {}]   ;;  %s3269_s4 = inlined_call_operand.hbm [shape: f32[16,32], index: 4, kind: output, shape index: {}]  }
   0x1   :  { %v20_v0 = vld [vmem:[%s3266_s1] sm:$0xff]  ;;  %v21_v1 = vld [vmem:[%s3266_s1 + $0x8] sm:$0xff]  ;;  %v22_v5 = vld [vmem:[%s3266_s1 + $0x10] sm:$0xff] }
   0x2   :  { %v24_v2 = vld [vmem:[%s3266_s1 + $0x20] sm:$0xff]  ;;  %v2629_v3 = vpack.c.bf16 %v21_v1, %v20_v0  ;;  %v25_v4 = vld [vmem:[%s3266_s1 + $0x28] sm:$0xff]  ;;  %v23_v6 = vld [vmem:[%s3266_s1 + $0x18] sm:$0xff] }
   0x3   :  { %v2637_v7 = vpack.c.bf16 %v25_v4, %v24_v2  ;;  %v2633_v8 = vpack.c.bf16 %v23_v6, %v22_v5  ;;  %v18_v9 = vld [vmem:[%s3265_s0] sm:$0xff]  ;;  %v26_v10 = vld [vmem:[%s3266_s1 + $0x30] sm:$0xff]  ;;  %v27_v11 = vld [vmem:[%s3266_s1 + $0x38] sm:$0xff] }
   0x4   :  { %2630 = vmatprep.subr.bf16.mxu0 %v2629_v3  ;;  %2457 = vmatprep.mubr.msk.f32.mxu0 %vm44_vm0, %v18_v9  ;;  %v2641_v12 = vpack.c.bf16 %v27_v11, %v26_v10  ;;  %v28_v13 = vld [vmem:[%s3266_s1 + $0x40] sm:$0xff]  ;;  %v29_v14 = vld [vmem:[%s3266_s1 + $0x48] sm:$0xff]  ;;  %v30_v19 = vld [vmem:[%s3266_s1 + $0x50] sm:$0xff] }
   0x5   :  { %2632 = vmatpush3.bf16.msra.mxu0 %v2629_v3  ;;  %2638 = vmatprep.subr.bf16.mxu1 %v2637_v7  ;;  %v32_v15 = vld [vmem:[%s3266_s1 + $0x60] sm:$0xff]  ;;  %v33_v16 = vld [vmem:[%s3266_s1 + $0x68] sm:$0xff]  ;;  %v2645_v17 = vpack.c.bf16 %v29_v14, %v28_v13  ;;  %v31_v20 = vld [vmem:[%s3266_s1 + $0x58] sm:$0xff] }
   0x6   :  { %2634 = vmatprep.subr.bf16.mxu0 %v2633_v8  ;;  %2640 = vmatpush3.bf16.msra.mxu1 %v2637_v7  ;;  %v2653_v18 = vpack.c.bf16 %v33_v16, %v32_v15  ;;  %v34_v21 = vld [vmem:[%s3266_s1 + $0x70] sm:$0xff]  ;;  %v35_v22 = vld [vmem:[%s3266_s1 + $0x78] sm:$0xff]  ;;  %v19_v23 = vld [vmem:[%s3265_s0 + $0x8] sm:$0xff] }
   0x7   :  { %2642 = vmatprep.subr.bf16.mxu1 %v2641_v12  ;;  %2468 = vmatprep.mubr.msk.f32.mxu1 %vm44_vm0, %v18_v9 }
   0x9   :  { %2636 = vmatpush3.bf16.msra.mxu0 %v2633_v8 }
   0xa   :  { %9 = vsyncpa [#allocation3], 0  ;;  %2644 = vmatpush3.bf16.msra.mxu1 %v2641_v12  ;;  %2646 = vmatprep.subr.bf16.mxu0 %v2645_v17  ;;  %v2649_v24 = vpack.c.bf16 %v31_v20, %v30_v19  ;;  %v2657_v25 = vpack.c.bf16 %v35_v22, %v34_v21  ;;  %v36_v26 = vld [vmem:[%s3266_s1 + $0x80] sm:$0xff]  ;;  %v37_v27 = vld [vmem:[%s3266_s1 + $0x88] sm:$0xff]  ;;  %vm519_vm1 = vcmask 64512   ;;  %vm1090_vm6 = vcmask 130048  }
   0xb   :  { %2654 = vmatprep.subr.bf16.mxu1 %v2653_v18  ;;  %v40_v28 = vld [vmem:[%s3266_s1 + $0xa0] sm:$0xff]  ;;  %v41_v29 = vld [vmem:[%s3266_s1 + $0xa8] sm:$0xff]  ;;  %v2661_v30 = vpack.c.bf16 %v37_v27, %v36_v26  ;;  %v38_v31 = vld [vmem:[%s3266_s1 + $0x90] sm:$0xff]  ;;  %s2875_s14 = smov 112   ;;  %s2876_s28 = smov [#allocation2]  }
   0xc   :  { %2458 = vmatmul.mubr.msk.f32.vlgmr.msra.gmra.mrb[0].mxu0 %vm44_vm0, %v19_v23  ;;  %v39_v32 = vld [vmem:[%s3266_s1 + $0x98] sm:$0xff]  ;;  %v2669_v33 = vpack.c.bf16 %v41_v29, %v40_v28  ;;  %v42_v34 = vld [vmem:[%s3266_s1 + $0xb0] sm:$0xff]  ;;  %vm3016_vm2 = vmpackc.low %vm519_vm1, %vm519_vm1  ;;  %v1060_v29 = vlaneseq  ;;  %s2275_s29 = sshll.u32 %s2876_s28, 4  ;;  %s2276_s29 = int_to_ptr.vmem [resolvable:$true] %s2275_s29 }
   0xd   :  { %2648 = vmatpush3.bf16.msra.mxu0 %v2645_v17  ;;  %2469 = vmatmul.mubr.msk.f32.vlgmr.msra.gmra.mrb[0].mxu1 %vm44_vm0, %v19_v23  ;;  %v43_v35 = vld [vmem:[%s3266_s1 + $0xb8] sm:$0xff]  ;;  %v2665_v36 = vpack.c.bf16 %v39_v32, %v38_v31  ;;  %s2874_s1 = smov 120   ;;  %s2850_s30 = scalar_lea.vmem %s2276_s29, 256 }
   0xe   :  { %2650 = vmatprep.subr.bf16.mxu0 %v2649_v24  ;;  %2656 = vmatpush3.bf16.msra.mxu1 %v2653_v18  ;;  %v2673_v37 = vpack.c.bf16 %v43_v35, %v42_v34  ;;  %v1064_v32 = vand.u32 127, %v1060_v29  ;;  %p2851_p0 = scmp.ne.s32.totalorder %s2276_s29, %s2850_s30  ;;  %p2855_p1 = scmp.lt.s32.totalorder %s2276_s29, %s2276_s29 }
   0xf   :  { %2479 = vmatprep.mubr.msk.f32.mxu0 %vm44_vm0, %v18_v9  ;;  %2658 = vmatprep.subr.bf16.mxu1 %v2657_v25  ;;  %p2856_p2 = scmp.lt.s32.totalorder %s2850_s30, %s2850_s30 }
  0x10   :  { %2490 = vmatprep.mubr.msk.f32.mxu1 %vm44_vm0, %v18_v9  ;;  %v1069_v34 = vand.u32 4294967288, %v1064_v32 }
  0x11   :  { %2652 = vmatpush3.bf16.msra.mxu0 %v2649_v24  ;;  %p2857_p3 = por %p2856_p2, %p2855_p1 }
  0x12   :  { %2660 = vmatpush3.bf16.msra.mxu1 %v2657_v25  ;;  %2662 = vmatprep.subr.bf16.mxu0 %v2661_v30 }
  0x13   :  { %2670 = vmatprep.subr.bf16.mxu1 %v2669_v33  ;;  %p2858_p4 = pnand %p2857_p3, %p2851_p0 }
  0x14   :  { %2480 = vmatmul.mubr.msk.f32.vlgmr.msra.gmra.mrb[2].mxu0 %vm44_vm0, %v19_v23 }
  0x15   :  { %2664 = vmatpush3.bf16.msra.mxu0 %v2661_v30  ;;  %2491 = vmatmul.mubr.msk.f32.vlgmr.msra.gmra.mrb[2].mxu1 %vm44_vm0, %v19_v23  ;;  %v1061_v30 = vshrl.u32 %v1060_v29, 7 }
  0x16   :  { %2666 = vmatprep.subr.bf16.mxu0 %v2665_v36  ;;  %2672 = vmatpush3.bf16.msra.mxu1 %v2669_v33 }
  0x17   :  { %2501 = vmatprep.mubr.msk.f32.mxu0 %vm44_vm0, %v18_v9  ;;  %2674 = vmatprep.subr.bf16.mxu1 %v2673_v37  ;;  %v1062_v31 = vadd.s32 8, %v1061_v30  ;;  %v1067_v35 = vand.u32 4294967288, %v1061_v30  ;;  %vm1065_vm7 = vcmp.ge.s32.totalorder %v1061_v30, %v1064_v32 }
  0x18   :  { %2512 = vmatprep.mubr.msk.f32.mxu1 %vm44_vm0, %v18_v9 }
  0x19   :  { %2668 = vmatpush3.bf16.msra.mxu0 %v2665_v36  ;;  %v1068_v33 = vand.u32 4294967288, %v1062_v31  ;;  %vm1066_vm3 = vcmp.ge.s32.totalorder %v1062_v31, %v1064_v32  ;;  %vm1070_vm8 = vcmp.eq.s32.totalorder %v1067_v35, %v1069_v34 }
  0x1a   :  { %2676 = vmatpush3.bf16.msra.mxu1 %v2673_v37  ;;  %vm3061_vm9 = vmand %vm1065_vm7, %vm1070_vm8 }
  0x1b   :  { %vm1071_vm4 = vcmp.eq.s32.totalorder %v1068_v33, %v1069_v34 }
  0x1c   :  { %2502 = vmatmul.mubr.msk.f32.vlgmr.msra.gmra.mrb[4].mxu0 %vm44_vm0, %v19_v23  ;;  %vm3054_vm5 = vmand %vm1066_vm3, %vm1071_vm4 }
  0x1d   :  { %2513 = vmatmul.mubr.msk.f32.vlgmr.msra.gmra.mrb[4].mxu1 %vm44_vm0, %v19_v23 }
  0xdf   :  { %v2459_v38 = vpop.f32.mrb[0].mxu0 }
  0xe0   :  { %v117_v39 = vpop.f32.mrb[1].mxu0  ;;  %v2470_v40 = vpop.f32.mrb[0].mxu1  ;;  %v502_v6 = vmul.f32 0.35355338, %v2459_v38 }
  0xe1   :  { %v2994_v41 = vpack.i.bf16 %v2459_v38, %v117_v39  ;;  %v501_v42 = vmul.f32 0.35355338, %v117_v39  ;;  %v192_v43 = vpop.f32.mrb[1].mxu1  ;;  %v504_v12 = vmul.f32 0.35355338, %v2470_v40 }
  0xe2   :  { %v2996_v44 = vpack.i.bf16 %v2470_v40, %v192_v43  ;;  %v503_v45 = vmul.f32 0.35355338, %v192_v43 }
  0xe3   :  { %2743 = vrot.lane.b32.xlu0 %v2994_v41, %s2874_s1  ;;  %2519 = vmatprep.mubr.msk.f32.mxu0 %vm519_vm1, %v501_v42 }
  0xe4   :  { %2526 = vmatprep.mubr.msk.f32.mxu1 %vm519_vm1, %v503_v45 }
  0xe7   :  { %2748 = vrot.lane.b32.xlu0 %v2996_v44, %s2874_s1  ;;  %v2481_v46 = vpop.f32.mrb[2].mxu0 }
  0xe8   :  { %v267_v47 = vpop.f32.mrb[3].mxu0  ;;  %v2492_v48 = vpop.f32.mrb[2].mxu1  ;;  %v506_v21 = vmul.f32 0.35355338, %v2481_v46 }
  0xe9   :  { %v3002_v49 = vpack.i.bf16 %v2481_v46, %v267_v47  ;;  %v342_v50 = vpop.f32.mrb[3].mxu1  ;;  %v505_v8 = vmul.f32 0.35355338, %v267_v47  ;;  %v508_v25 = vmul.f32 0.35355338, %v2492_v48 }
  0xea   :  { %v3004_v51 = vpack.i.bf16 %v2492_v48, %v342_v50  ;;  %v507_v14 = vmul.f32 0.35355338, %v342_v50 }
  0xeb   :  { %2753 = vrot.lane.b32.xlu1 %v3002_v49, %s2874_s1 }
  0xef   :  { %2758 = vrot.lane.b32.xlu1 %v3004_v51, %s2874_s1  ;;  %v2503_v52 = vpop.f32.mrb[4].mxu0 }
  0xf0   :  { %v417_v53 = vpop.f32.mrb[5].mxu0  ;;  %v2514_v54 = vpop.f32.mrb[4].mxu1  ;;  %v510_v27 = vmul.f32 0.35355338, %v2503_v52 }
  0xf1   :  { %v3008_v55 = vpack.i.bf16 %v2503_v52, %v417_v53  ;;  %v492_v56 = vpop.f32.mrb[5].mxu1  ;;  %v509_v23 = vmul.f32 0.35355338, %v417_v53  ;;  %v512_v28 = vmul.f32 0.35355338, %v2514_v54 }
  0xf2   :  { %v3010_v57 = vpack.i.bf16 %v2514_v54, %v492_v56  ;;  %v511_v26 = vmul.f32 0.35355338, %v492_v56 }
  0xf3   :  { %2763 = vrot.lane.b32.xlu0 %v3008_v55, %s2874_s1 }
  0xf4   :  { %2768 = vrot.lane.b32.xlu1 %v3010_v57, %s2874_s1 }
 0x155   :  { %v2744_v58 = vpop.permute.xlu0 %2743 }
 0x156   :  { %v2746_v59 = vunpack.i.h.bf16 %v2744_v58  ;;  %v2745_v60 = vunpack.i.l.bf16 %v2744_v58 }
 0x158   :  { %v2677_v62 = vpack.c.bf16 %v2746_v59, %v2745_v60 }
 0x159   :  { %v2749_v63 = vpop.permute.xlu0 %2748 }
 0x15a   :  { %v2751_v0 = vunpack.i.h.bf16 %v2749_v63  ;;  %v2750_v1 = vunpack.i.l.bf16 %v2749_v63  ;;  %2679 = vmatprep.subr.msk.bf16.mxu0 %vm3016_vm2, %v2677_v62 }
 0x15b   :  { %2682 = vmatpush3.bf16.xpose.msk.msra.mxu0 %vm3016_vm2, %v2677_v62 }
 0x15c   :  { %v2683_v2 = vpack.c.bf16 %v2751_v0, %v2750_v1 }
 0x15d   :  { %v2754_v3 = vpop.permute.xlu1 %2753 }
 0x15e   :  { %v2756_v4 = vunpack.i.h.bf16 %v2754_v3  ;;  %v2755_v5 = vunpack.i.l.bf16 %v2754_v3  ;;  %2685 = vmatprep.subr.msk.bf16.mxu1 %vm3016_vm2, %v2683_v2 }
 0x15f   :  { %2688 = vmatpush3.bf16.xpose.msk.msra.mxu1 %vm3016_vm2, %v2683_v2 }
 0x160   :  { %v2689_v7 = vpack.c.bf16 %v2756_v4, %v2755_v5 }
 0x161   :  { %v2759_v9 = vpop.permute.xlu1 %2758 }
 0x162   :  { %v2761_v10 = vunpack.i.h.bf16 %v2759_v9  ;;  %v2760_v11 = vunpack.i.l.bf16 %v2759_v9  ;;  %2520 = vmatmul.mubr.msk.f32.vlgmr.msra.gmra.mrb[6].mxu0 %vm519_vm1, %v502_v6  ;;  %2691 = vmatprep.subr.msk.bf16.mxu0 %vm3016_vm2, %v2689_v7 }
 0x163   :  { %2694 = vmatpush3.bf16.xpose.msk.msra.mxu0 %vm3016_vm2, %v2689_v7  ;;  %2533 = vmatprep.mubr.msk.f32.mxu0 %vm519_vm1, %v505_v8 }
 0x164   :  { %v2695_v13 = vpack.c.bf16 %v2761_v10, %v2760_v11 }
 0x165   :  { %v2764_v15 = vpop.permute.xlu0 %2763 }
 0x166   :  { %v2766_v16 = vunpack.i.h.bf16 %v2764_v15  ;;  %v2765_v17 = vunpack.i.l.bf16 %v2764_v15  ;;  %2527 = vmatmul.mubr.msk.f32.vlgmr.msra.gmra.mrb[6].mxu1 %vm519_vm1, %v504_v12  ;;  %2697 = vmatprep.subr.msk.bf16.mxu1 %vm3016_vm2, %v2695_v13  ;;  %v2769_v18 = vpop.permute.xlu1 %2768 }
 0x167   :  { %2700 = vmatpush3.bf16.xpose.msk.msra.mxu1 %vm3016_vm2, %v2695_v13  ;;  %2540 = vmatprep.mubr.msk.f32.mxu1 %vm519_vm1, %v507_v14  ;;  %v2771_v19 = vunpack.i.h.bf16 %v2769_v18  ;;  %v2770_v20 = vunpack.i.l.bf16 %v2769_v18 }
 0x168   :  { %v2701_v22 = vpack.c.bf16 %v2766_v16, %v2765_v17 }
 0x169   :  { %v2707_v24 = vpack.c.bf16 %v2771_v19, %v2770_v20 }
 0x16a   :  { %2534 = vmatmul.mubr.msk.f32.vlgmr.msra.gmra.mrb[8].mxu0 %vm519_vm1, %v506_v21  ;;  %2703 = vmatprep.subr.msk.bf16.mxu0 %vm3016_vm2, %v2701_v22 }
 0x16b   :  { %2706 = vmatpush3.bf16.xpose.msk.msra.mxu0 %vm3016_vm2, %v2701_v22  ;;  %2547 = vmatprep.mubr.msk.f32.mxu0 %vm519_vm1, %v509_v23 }
 0x16c   :  { %2709 = vmatprep.subr.msk.bf16.mxu1 %vm3016_vm2, %v2707_v24 }
 0x16e   :  { %2541 = vmatmul.mubr.msk.f32.vlgmr.msra.gmra.mrb[8].mxu1 %vm519_vm1, %v508_v25 }
 0x16f   :  { %2712 = vmatpush3.bf16.xpose.msk.msra.mxu1 %vm3016_vm2, %v2707_v24  ;;  %2554 = vmatprep.mubr.msk.f32.mxu1 %vm519_vm1, %v511_v26 }
 0x172   :  { %2548 = vmatmul.mubr.msk.f32.vlgmr.msra.gmra.mrb[10].mxu0 %vm519_vm1, %v510_v27 }
 0x176   :  { %2555 = vmatmul.mubr.msk.f32.vlgmr.msra.gmra.mrb[10].mxu1 %vm519_vm1, %v512_v28 }
 0x235   :  { %v2521_v37 = vpop.f32.mrb[6].mxu0 }
 0x236   :  { %v1079_v38 = vsel %vm3054_vm5, %v2521_v37, -3.4028235e+38  ;;  %v596_v39 = vpop.f32.mrb[7].mxu0 }
 0x237   :  { %v1094_v40 = vsel %vm1090_vm6, %v1079_v38, -inf  ;;  %v1078_v48 = vsel %vm3061_vm9, %v596_v39, -3.4028235e+38 }
 0x238   :  { %1095 = vmax.xlane.f32.xlu1 %v1094_v40  ;;  %v1091_v54 = vsel %vm1090_vm6, %v1078_v48, -inf }
 0x239   :  { %v2528_v43 = vpop.f32.mrb[6].mxu1 }
 0x23a   :  { %v1081_v45 = vsel %vm3054_vm5, %v2528_v43, -3.4028235e+38  ;;  %v687_v46 = vpop.f32.mrb[7].mxu1 }
 0x23b   :  { %v1100_v47 = vsel %vm1090_vm6, %v1081_v45, -inf  ;;  %v1080_v56 = vsel %vm3061_vm9, %v687_v46, -3.4028235e+38 }
 0x23c   :  { %1101 = vmax.xlane.f32.xlu0 %v1100_v47  ;;  %v1097_v62 = vsel %vm1090_vm6, %v1080_v56, -inf }
 0x23d   :  { %v2535_v50 = vpop.f32.mrb[8].mxu0 }
 0x23e   :  { %v778_v52 = vpop.f32.mrb[9].mxu0  ;;  %v1083_v63 = vsel %vm3054_vm5, %v2535_v50, -3.4028235e+38 }
 0x23f   :  { %v1082_v53 = vsel %vm3061_vm9, %v778_v52, -3.4028235e+38  ;;  %v1106_v3 = vsel %vm1090_vm6, %v1083_v63, -inf }
 0x240   :  { %1092 = vmax.xlane.f32.xlu0 %v1091_v54  ;;  %v1103_v58 = vsel %vm1090_vm6, %v1082_v53, -inf }
 0x241   :  { %v2542_v59 = vpop.f32.mrb[8].mxu1  ;;  %1104 = vmax.xlane.f32.xlu1 %v1103_v58 }
 0x242   :  { %v869_v60 = vpop.f32.mrb[9].mxu1  ;;  %v3088_v4 = vsel %vm3054_vm5, %v2542_v59, -3.4028235e+38 }
 0x243   :  { %v3078_v61 = vsel %vm3061_vm9, %v869_v60, -3.4028235e+38  ;;  %v1112_v7 = vsel %vm1090_vm6, %v3088_v4, -inf }
 0x244   :  { %1098 = vmax.xlane.f32.xlu0 %v1097_v62  ;;  %v1109_v0 = vsel %vm1090_vm6, %v3078_v61, -inf }
 0x245   :  { %1110 = vmax.xlane.f32.xlu1 %v1109_v0  ;;  %v2549_v1 = vpop.f32.mrb[10].mxu0 }
 0x246   :  { %v960_v2 = vpop.f32.mrb[11].mxu0  ;;  %v3094_v8 = vsel %vm3054_vm5, %v2549_v1, -3.4028235e+38 }
 0x247   :  { %v1118_v9 = vsel %vm1090_vm6, %v3094_v8, -inf  ;;  %v3110_v12 = vsel %vm3061_vm9, %v960_v2, -3.4028235e+38 }
 0x248   :  { %1107 = vmax.xlane.f32.xlu0 %v1106_v3  ;;  %v1115_v13 = vsel %vm1090_vm6, %v3110_v12, -inf }
 0x249   :  { %v2556_v5 = vpop.f32.mrb[10].mxu1 }
 0x24a   :  { %v1051_v6 = vpop.f32.mrb[11].mxu1  ;;  %v3100_v10 = vsel %vm3054_vm5, %v2556_v5, -3.4028235e+38 }
 0x24b   :  { %v1124_v11 = vsel %vm1090_vm6, %v3100_v10, -inf  ;;  %v3116_v14 = vsel %vm3061_vm9, %v1051_v6, -3.4028235e+38 }
 0x24c   :  { %1113 = vmax.xlane.f32.xlu0 %v1112_v7  ;;  %v1121_v15 = vsel %vm1090_vm6, %v3116_v14, -inf }
 0x250   :  { %1119 = vmax.xlane.f32.xlu0 %v1118_v9 }
 0x254   :  { %1125 = vmax.xlane.f32.xlu0 %v1124_v11 }
 0x256   :  { %2773 = vrot.lane.b32.xlu1 %v2994_v41, %s2875_s14 }
 0x26a   :  { %2778 = vrot.lane.b32.xlu0 %v2996_v44, %s2875_s14 }
 0x27a   :  { %1116 = vmax.xlane.f32.xlu1 %v1115_v13 }
 0x27e   :  { %1122 = vmax.xlane.f32.xlu1 %v1121_v15 }
 0x28f   :  { %2783 = vrot.lane.b32.xlu1 %v3002_v49, %s2875_s14 }
 0x293   :  { %2788 = vrot.lane.b32.xlu1 %v3004_v51, %s2875_s14 }
 0x2c5   :  { %v1096_v41 = vpop.xlane.xlu1 %1095 }
 0x2c6   :  { %v1128_v44 = vsub.f32 %v1079_v38, %v1096_v41 }
 0x2c8   :  { %v1141_v16 = vmul.f32 1.442695, %v1128_v44 }
 0x2c9   :  { %v1102_v17 = vpop.xlane.xlu0 %1101 }
 0x2ca   :  { %2802 = vpow2.f32 %v1141_v16  ;;  %v1130_v18 = vsub.f32 %v1081_v45, %v1102_v17 }
 0x2cc   :  { %v1145_v19 = vmul.f32 1.442695, %v1130_v18 }
 0x2cd   :  { %v1093_v20 = vpop.xlane.xlu0 %1092 }
 0x2ce   :  { %2804 = vpow2.f32 %v1145_v19  ;;  %v1127_v21 = vsub.f32 %v1078_v48, %v1093_v20  ;;  %v1105_v22 = vpop.xlane.xlu1 %1104 }
 0x2cf   :  { %v1131_v24 = vsub.f32 %v1082_v53, %v1105_v22 }
 0x2d0   :  { %v1139_v23 = vmul.f32 1.442695, %v1127_v21 }
 0x2d1   :  { %v1099_v25 = vpop.xlane.xlu0 %1098  ;;  %v1147_v51 = vmul.f32 1.442695, %v1131_v24 }
 0x2d2   :  { %2806 = vpow2.f32 %v1139_v23  ;;  %v1129_v26 = vsub.f32 %v1080_v56, %v1099_v25  ;;  %v1111_v49 = vpop.xlane.xlu1 %1110 }
 0x2d3   :  { %v1133_v29 = vsub.f32 %v3078_v61, %v1111_v49 }
 0x2d4   :  { %v3124_v27 = vpop.eup %2802  ;;  %v1143_v28 = vmul.f32 1.442695, %v1129_v26 }
 0x2d5   :  { %v1108_v30 = vpop.xlane.xlu0 %1107  ;;  %v1166_v31 = vsel %vm1090_vm6, %v3124_v27, 0.0  ;;  %v1151_v38 = vmul.f32 1.442695, %v1133_v29 }
 0x2d6   :  { %2808 = vpow2.f32 %v1143_v28  ;;  %v1132_v32 = vsub.f32 %v1083_v63, %v1108_v30  ;;  %v2774_v33 = vpop.permute.xlu1 %2773  ;;  %1167 = vadd.xlane.f32.xlu0 %v1166_v31 }
 0x2d7   :  { %v2776_v34 = vunpack.i.h.bf16 %v2774_v33  ;;  %v2775_v35 = vunpack.i.l.bf16 %v2774_v33  ;;  %2810 = vpow2.f32 %v1147_v51 }
 0x2d8   :  { %v3129_v36 = vpop.eup %2804  ;;  %v1149_v37 = vmul.f32 1.442695, %v1132_v32 }
 0x2d9   :  { %v2713_v39 = vpack.c.bf16 %v2776_v34, %v2775_v35  ;;  %v1114_v40 = vpop.xlane.xlu0 %1113  ;;  %v1172_v42 = vsel %vm1090_vm6, %v3129_v36, 0.0 }
 0x2da   :  { %2812 = vpow2.f32 %v1149_v37  ;;  %v1134_v43 = vsub.f32 %v3088_v4, %v1114_v40  ;;  %1173 = vadd.xlane.f32.xlu0 %v1172_v42 }
 0x2db   :  { %2714 = vmatprep.subr.bf16.mxu0 %v2713_v39  ;;  %2814 = vpow2.f32 %v1151_v38 }
 0x2dc   :  { %v3134_v45 = vpop.eup %2806  ;;  %v1153_v46 = vmul.f32 1.442695, %v1134_v43  ;;  %2716 = vmatpush3.bf16.msra.mxu0 %v2713_v39 }
 0x2dd   :  { %v1120_v47 = vpop.xlane.xlu0 %1119  ;;  %v1163_v48 = vsel %vm1090_vm6, %v3134_v45, 0.0 }
 0x2de   :  { %2816 = vpow2.f32 %v1153_v46  ;;  %v1136_v50 = vsub.f32 %v3094_v8, %v1120_v47  ;;  %1164 = vadd.xlane.f32.xlu1 %v1163_v48 }
 0x2e0   :  { %v3139_v52 = vpop.eup %2808  ;;  %v1157_v53 = vmul.f32 1.442695, %v1136_v50 }
 0x2e1   :  { %v1126_v54 = vpop.xlane.xlu0 %1125  ;;  %v1169_v56 = vsel %vm1090_vm6, %v3139_v52, 0.0  ;;  %v3143_v58 = vpop.eup %2810 }
 0x2e2   :  { %2818 = vpow2.f32 %v1157_v53  ;;  %v1138_v59 = vsub.f32 %v3100_v10, %v1126_v54  ;;  %1170 = vadd.xlane.f32.xlu1 %v1169_v56  ;;  %v1175_v0 = vsel %vm1090_vm6, %v3143_v58, 0.0 }
 0x2e4   :  { %v3146_v60 = vpop.eup %2812  ;;  %v1161_v61 = vmul.f32 1.442695, %v1138_v59 }
 0x2e5   :  { %v2779_v62 = vpop.permute.xlu0 %2778  ;;  %v1178_v63 = vsel %vm1090_vm6, %v3146_v60, 0.0  ;;  %v3152_v3 = vpop.eup %2814 }
 0x2e6   :  { %2820 = vpow2.f32 %v1161_v61  ;;  %v2781_v1 = vunpack.i.h.bf16 %v2779_v62  ;;  %v2780_v2 = vunpack.i.l.bf16 %v2779_v62  ;;  %1179 = vadd.xlane.f32.xlu0 %v1178_v63  ;;  %1176 = vadd.xlane.f32.xlu1 %v1175_v0  ;;  %v1181_v7 = vsel %vm1090_vm6, %v3152_v3, 0.0 }
 0x2e8   :  { %v3154_v4 = vpop.eup %2816  ;;  %v2717_v5 = vpack.c.bf16 %v2781_v1, %v2780_v2 }
 0x2e9   :  { %v1184_v6 = vsel %vm1090_vm6, %v3154_v4, 0.0 }
 0x2ea   :  { %1185 = vadd.xlane.f32.xlu0 %v1184_v6  ;;  %2718 = vmatprep.subr.bf16.mxu1 %v2717_v5 }
 0x2eb   :  { %1182 = vadd.xlane.f32.xlu1 %v1181_v7  ;;  %2720 = vmatpush3.bf16.msra.mxu1 %v2717_v5 }
 0x2ec   :  { %v3160_v8 = vpop.eup %2818 }
 0x2ed   :  { %v1190_v9 = vsel %vm1090_vm6, %v3160_v8, 0.0 }
 0x2ee   :  { %1191 = vadd.xlane.f32.xlu0 %v1190_v9 }
 0x2f0   :  { %v3164_v10 = vpop.eup %2820 }
 0x2f1   :  { %v1196_v11 = vsel %vm1090_vm6, %v3164_v10, 0.0 }
 0x2f2   :  { %1197 = vadd.xlane.f32.xlu0 %v1196_v11 }
 0x307   :  { %v1117_v13 = vpop.xlane.xlu1 %1116 }
 0x308   :  { %v1135_v15 = vsub.f32 %v3110_v12, %v1117_v13  ;;  %2793 = vrot.lane.b32.xlu0 %v3008_v55, %s2875_s14  ;;  %v1746_v13 = vld [vmem:[%s3267_s2 + $0x8] sm:$0xff] }
 0x30a   :  { %v1155_v41 = vmul.f32 1.442695, %v1135_v15  ;;  %v1748_v15 = vld [vmem:[%s3267_s2 + $0x18] sm:$0xff] }
 0x30b   :  { %v1123_v44 = vpop.xlane.xlu1 %1122 }
 0x30c   :  { %2822 = vpow2.f32 %v1155_v41  ;;  %v1137_v16 = vsub.f32 %v3116_v14, %v1123_v44 }
 0x30e   :  { %v1159_v17 = vmul.f32 1.442695, %v1137_v16  ;;  %v1749_v16 = vld [vmem:[%s3267_s2 + $0x20] sm:$0xff] }
 0x30f   :  { %v2784_v18 = vpop.permute.xlu1 %2783 }
 0x310   :  { %2824 = vpow2.f32 %v1159_v17  ;;  %v2786_v19 = vunpack.i.h.bf16 %v2784_v18  ;;  %v2785_v20 = vunpack.i.l.bf16 %v2784_v18 }
 0x312   :  { %v2721_v21 = vpack.c.bf16 %v2786_v19, %v2785_v20  ;;  %v1750_v19 = vld [vmem:[%s3267_s2 + $0x28] sm:$0xff] }
 0x313   :  { %v2789_v22 = vpop.permute.xlu1 %2788 }
 0x314   :  { %v2791_v23 = vunpack.i.h.bf16 %v2789_v22  ;;  %v2790_v24 = vunpack.i.l.bf16 %v2789_v22  ;;  %2722 = vmatprep.subr.bf16.mxu0 %v2721_v21 }
 0x316   :  { %v3172_v25 = vpop.eup %2822  ;;  %v2725_v12 = vpack.c.bf16 %v2791_v23, %v2790_v24 }
 0x317   :  { %v1187_v55 = vsel %vm1090_vm6, %v3172_v25, 0.0 }
 0x318   :  { %1188 = vadd.xlane.f32.xlu1 %v1187_v55  ;;  %2726 = vmatprep.subr.bf16.mxu1 %v2725_v12 }
 0x31a   :  { %v3176_v26 = vpop.eup %2824 }
 0x31b   :  { %v1193_v14 = vsel %vm1090_vm6, %v3176_v26, 0.0 }
 0x31c   :  { %1194 = vadd.xlane.f32.xlu1 %v1193_v14 }
 0x32d   :  { %2798 = vrot.lane.b32.xlu1 %v3010_v57, %s2875_s14 }
 0x363   :  { %v1168_v49 = vpop.xlane.xlu0 %1167 }
 0x364   :  { %2826 = vrcp.f32 %v1168_v49 }
 0x367   :  { %v1174_v28 = vpop.xlane.xlu0 %1173 }
 0x36b   :  { %v1165_v51 = vpop.xlane.xlu1 %1164 }
 0x36c   :  { %2828 = vrcp.f32 %v1165_v51 }
 0x36d   :  { %2830 = vrcp.f32 %v1174_v28 }
 0x36e   :  { %v2827_v32 = vpop.eup %2826 }
 0x36f   :  { %v1171_v29 = vpop.xlane.xlu1 %1170  ;;  %v1212_v37 = vmul.f32 %v2827_v32, %v3124_v27 }
 0x370   :  { %2832 = vrcp.f32 %v1171_v29 }
 0x373   :  { %v1180_v30 = vpop.xlane.xlu0 %1179  ;;  %v1177_v31 = vpop.xlane.xlu1 %1176 }
 0x374   :  { %2834 = vrcp.f32 %v1180_v30 }
 0x375   :  { %2836 = vrcp.f32 %v1177_v31 }
 0x376   :  { %v2829_v33 = vpop.eup %2828 }
 0x377   :  { %v1186_v34 = vpop.xlane.xlu0 %1185  ;;  %v1211_v35 = vmul.f32 %v2829_v33, %v3134_v45  ;;  %v2831_v38 = vpop.eup %2830 }
 0x378   :  { %2838 = vrcp.f32 %v1186_v34  ;;  %v1183_v57 = vpop.xlane.xlu1 %1182  ;;  %v1214_v43 = vmul.f32 %v2831_v38, %v3129_v36 }
 0x379   :  { %2840 = vrcp.f32 %v1183_v57  ;;  %2561 = vmatprep.mubr.msk.f32.mxu0 %vm1090_vm6, %v1211_v35 }
 0x37a   :  { %v2833_v39 = vpop.eup %2832  ;;  %2562 = vmatmul.mubr.msk.f32.vlgmr.msra.gmra.mrb[12].mxu0 %vm1090_vm6, %v1212_v37 }
 0x37b   :  { %2724 = vmatpush3.bf16.msra.mxu0 %v2721_v21  ;;  %v1192_v40 = vpop.xlane.xlu0 %1191  ;;  %v1213_v42 = vmul.f32 %v2833_v39, %v3139_v52 }
 0x37c   :  { %2842 = vrcp.f32 %v1192_v40 }
 0x37d   :  { %2568 = vmatprep.mubr.msk.f32.mxu1 %vm1090_vm6, %v1213_v42 }
 0x37e   :  { %v2835_v45 = vpop.eup %2834  ;;  %2569 = vmatmul.mubr.msk.f32.vlgmr.msra.gmra.mrb[12].mxu1 %vm1090_vm6, %v1214_v43 }
 0x37f   :  { %v2837_v27 = vpop.eup %2836  ;;  %v1216_v46 = vmul.f32 %v2835_v45, %v3146_v60  ;;  %2728 = vmatpush3.bf16.msra.mxu1 %v2725_v12  ;;  %v1198_v47 = vpop.xlane.xlu0 %1197 }
 0x380   :  { %v1215_v48 = vmul.f32 %v2837_v27, %v3143_v58 }
 0x382   :  { %v2839_v50 = vpop.eup %2838  ;;  %2575 = vmatprep.mubr.msk.f32.mxu0 %vm1090_vm6, %v1215_v48 }
 0x383   :  { %v2841_v53 = vpop.eup %2840  ;;  %v1218_v52 = vmul.f32 %v2839_v50, %v3154_v4  ;;  %2576 = vmatmul.mubr.msk.f32.vlgmr.msra.gmra.mrb[14].mxu0 %vm1090_vm6, %v1216_v46  ;;  %v2794_v36 = vpop.permute.xlu0 %2793 }
 0x384   :  { %v2796_v54 = vunpack.i.h.bf16 %v2794_v36  ;;  %v2795_v56 = vunpack.i.l.bf16 %v2794_v36  ;;  %v1217_v59 = vmul.f32 %v2841_v53, %v3152_v3 }
 0x386   :  { %v2729_v61 = vpack.c.bf16 %v2796_v54, %v2795_v56  ;;  %2582 = vmatprep.mubr.msk.f32.mxu1 %vm1090_vm6, %v1217_v59  ;;  %v2843_v1 = vpop.eup %2842  ;;  %v2346_v59 = vld [vmem:[%s3268_s3] ss:$0 sm:$0xff] }
 0x387   :  { %2583 = vmatmul.mubr.msk.f32.vlgmr.msra.gmra.mrb[14].mxu1 %vm1090_vm6, %v1218_v52  ;;  %v1220_v5 = vmul.f32 %v2843_v1, %v3160_v8  ;;  %v1745_v8 = vld [vmem:[%s3267_s2] sm:$0xff] }
 0x388   :  { %2730 = vmatprep.subr.bf16.mxu0 %v2729_v61 }
 0x389   :  { %2732 = vmatpush3.bf16.msra.mxu0 %v2729_v61 }
 0x38a   :  { %2599 = vmatprep.subr.mxu0 %v1745_v8 }
 0x3a5   :  { %v1189_v58 = vpop.xlane.xlu1 %1188 }
 0x3a6   :  { %2844 = vrcp.f32 %v1189_v58 }
 0x3a7   :  { %2846 = vrcp.f32 %v1198_v47 }
 0x3a9   :  { %v1195_v60 = vpop.xlane.xlu1 %1194 }
 0x3aa   :  { %2848 = vrcp.f32 %v1195_v60 }
 0x3ad   :  { %v2799_v62 = vpop.permute.xlu1 %2798 }
 0x3ae   :  { %v2801_v63 = vunpack.i.h.bf16 %v2799_v62  ;;  %v2800_v0 = vunpack.i.l.bf16 %v2799_v62 }
 0x3b0   :  { %v2845_v2 = vpop.eup %2844  ;;  %v2733_v4 = vpack.c.bf16 %v2801_v63, %v2800_v0 }
 0x3b1   :  { %v1219_v3 = vmul.f32 %v2845_v2, %v3172_v25  ;;  %v2847_v6 = vpop.eup %2846 }
 0x3b2   :  { %2734 = vmatprep.subr.bf16.mxu1 %v2733_v4  ;;  %v1222_v11 = vmul.f32 %v2847_v6, %v3164_v10  ;;  %v1747_v10 = vld [vmem:[%s3267_s2 + $0x10] sm:$0xff] }
 0x3b3   :  { %2589 = vmatprep.mubr.msk.f32.mxu0 %vm1090_vm6, %v1219_v3  ;;  %2736 = vmatpush3.bf16.msra.mxu1 %v2733_v4 }
 0x3b4   :  { %v2849_v7 = vpop.eup %2848  ;;  %2590 = vmatmul.mubr.msk.f32.vlgmr.msra.gmra.mrb[16].mxu0 %vm1090_vm6, %v1220_v5  ;;  %2604 = vmatprep.subr.mxu1 %v1746_v13 }
 0x3b5   :  { %v1221_v9 = vmul.f32 %v2849_v7, %v3176_v26  ;;  %2600 = vmatpush3.msra.mxu0 %v1745_v8 }
 0x3b6   :  { %2609 = vmatprep.subr.mxu0 %v1747_v10 }
 0x3b7   :  { %2596 = vmatprep.mubr.msk.f32.mxu1 %vm1090_vm6, %v1221_v9 }
 0x3b8   :  { %2597 = vmatmul.mubr.msk.f32.vlgmr.msra.gmra.mrb[16].mxu1 %vm1090_vm6, %v1222_v11 }
 0x3b9   :  { %2605 = vmatpush3.msra.mxu1 %v1746_v13 }
 0x3ba   :  { %2614 = vmatprep.subr.mxu1 %v1748_v15 }
 0x44d   :  { %v2563_v41 = vpop.f32.mrb[12].mxu0 }
 0x44e   :  { %v1301_v44 = vpop.f32.mrb[13].mxu0 }
 0x44f   :  { %2601 = vmatprep.mubr.msk.f32.mxu0 %vm519_vm1, %v1301_v44 }
 0x450   :  { %2602 = vmatmul.mubr.msk.f32.vlgmr.msra.gmra.mrb[18].mxu0 %vm519_vm1, %v2563_v41 }
 0x451   :  { %v2570_v17 = vpop.f32.mrb[12].mxu1  ;;  %2610 = vmatpush3.msra.mxu0 %v1747_v10 }
 0x452   :  { %v1388_v18 = vpop.f32.mrb[13].mxu1  ;;  %2619 = vmatprep.subr.mxu0 %v1749_v16 }
 0x453   :  { %2606 = vmatprep.mubr.msk.f32.mxu1 %vm519_vm1, %v1388_v18 }
 0x454   :  { %2607 = vmatmul.mubr.msk.f32.vlgmr.msra.gmra.mrb[18].mxu1 %vm519_vm1, %v2570_v17 }
 0x455   :  { %2615 = vmatpush3.msra.mxu1 %v1748_v15 }
 0x456   :  { %v2577_v20 = vpop.f32.mrb[14].mxu0  ;;  %2624 = vmatprep.subr.mxu1 %v1750_v19 }
 0x457   :  { %v1475_v21 = vpop.f32.mrb[15].mxu0 }
 0x458   :  { %2611 = vmatprep.mubr.msk.f32.mxu0 %vm519_vm1, %v1475_v21 }
 0x459   :  { %2612 = vmatmul.mubr.msk.f32.vlgmr.msra.gmra.mrb[20].mxu0 %vm519_vm1, %v2577_v20 }
 0x45a   :  { %v2584_v22 = vpop.f32.mrb[14].mxu1  ;;  %2620 = vmatpush3.msra.mxu0 %v1749_v16 }
 0x45b   :  { %v1562_v23 = vpop.f32.mrb[15].mxu1 }
 0x45c   :  { %2616 = vmatprep.mubr.msk.f32.mxu1 %vm519_vm1, %v1562_v23 }
 0x45d   :  { %2617 = vmatmul.mubr.msk.f32.vlgmr.msra.gmra.mrb[20].mxu1 %vm519_vm1, %v2584_v22 }
 0x45e   :  { %2625 = vmatpush3.msra.mxu1 %v1750_v19 }
 0x487   :  { %v2591_v24 = vpop.f32.mrb[16].mxu0 }
 0x488   :  { %v1649_v25 = vpop.f32.mrb[17].mxu0 }
 0x489   :  { %2621 = vmatprep.mubr.msk.f32.mxu0 %vm519_vm1, %v1649_v25 }
 0x48a   :  { %2622 = vmatmul.mubr.msk.f32.vlgmr.msra.gmra.mrb[22].mxu0 %vm519_vm1, %v2591_v24 }
 0x48b   :  { %v2598_v12 = vpop.f32.mrb[16].mxu1 }
 0x48c   :  { %v1736_v55 = vpop.f32.mrb[17].mxu1 }
 0x48d   :  { %2626 = vmatprep.mubr.msk.f32.mxu1 %vm519_vm1, %v1736_v55 }
 0x48e   :  { %2627 = vmatmul.mubr.msk.f32.vlgmr.msra.gmra.mrb[22].mxu1 %vm519_vm1, %v2598_v12 }
 0x523   :  { %v2603_v26 = vpop.f32.mrb[18].mxu0 }
 0x524   :  { %v1823_v14 = vpop.f32.mrb[19].mxu0  ;;  %v2248_v51 = vsel %vm44_vm0, %v2603_v26, 0.0 }
 0x525   :  { %v2237_v30 = vsel %vm44_vm0, %v1823_v14, 0.0 }
 0x527   :  { %v2608_v49 = vpop.f32.mrb[18].mxu1 }
 0x528   :  { %v2249_v28 = vsel %vm44_vm0, %v2608_v49, 0.0  ;;  %v1904_v29 = vpop.f32.mrb[19].mxu1 }
 0x529   :  { %v2250_v31 = vadd.f32 %v2249_v28, %v2248_v51  ;;  %v2238_v32 = vsel %vm44_vm0, %v1904_v29, 0.0 }
 0x52a   :  { %v2239_v33 = vadd.f32 %v2238_v32, %v2237_v30 }
 0x52c   :  { %v2613_v34 = vpop.f32.mrb[20].mxu0 }
 0x52d   :  { %v2251_v35 = vsel %vm44_vm0, %v2613_v34, 0.0  ;;  %v1985_v37 = vpop.f32.mrb[21].mxu0 }
 0x52e   :  { %v2252_v57 = vadd.f32 %v2251_v35, %v2250_v31  ;;  %v2240_v38 = vsel %vm44_vm0, %v1985_v37, 0.0 }
 0x52f   :  { %v2241_v39 = vadd.f32 %v2240_v38, %v2239_v33 }
 0x530   :  { %v2618_v40 = vpop.f32.mrb[20].mxu1 }
 0x531   :  { %v2253_v42 = vsel %vm44_vm0, %v2618_v40, 0.0  ;;  %v2066_v43 = vpop.f32.mrb[21].mxu1 }
 0x532   :  { %v2254_v45 = vadd.f32 %v2253_v42, %v2252_v57  ;;  %v2242_v27 = vsel %vm44_vm0, %v2066_v43, 0.0 }
 0x533   :  { %v2243_v46 = vadd.f32 %v2242_v27, %v2241_v39 }
 0x55d   :  { %v2623_v47 = vpop.f32.mrb[22].mxu0 }
 0x55e   :  { %v2255_v48 = vsel %vm44_vm0, %v2623_v47, 0.0  ;;  %v2147_v50 = vpop.f32.mrb[23].mxu0 }
 0x55f   :  { %v2256_v53 = vadd.f32 %v2255_v48, %v2254_v45  ;;  %v2244_v52 = vsel %vm44_vm0, %v2147_v50, 0.0 }
 0x560   :  { %v2245_v36 = vadd.f32 %v2244_v52, %v2243_v46 }
 0x561   :  { %v2628_v54 = vpop.f32.mrb[22].mxu1 }
 0x562   :  { %v2257_v56 = vsel %vm44_vm0, %v2628_v54, 0.0  ;;  %v2228_v61 = vpop.f32.mrb[23].mxu1 }
 0x563   :  { %v2258_v58 = vadd.f32 %v2257_v56, %v2256_v53  ;;  %v2246_v60 = vsel %vm44_vm0, %v2228_v61, 0.0 }
 0x564   :  { %v2247_v62 = vadd.f32 %v2246_v60, %v2245_v36 }
 0x565   :  { %v2267_v63 = vadd.f32 %v2346_v59, %v2258_v58 }
 0x566   :  { %v2266_v0 = vadd.f32 %v2346_v59, %v2247_v62 }
 0x567   :  { %2269 = vst.msk [vmem:[#allocation2 + $0x8] sm:$0xff] %vm44_vm0, %v2267_v63 }
 0x568   :  { %2268 = vst.msk [vmem:[#allocation2] sm:$0xff] %vm44_vm0, %v2266_v0 }
 0x569   :  { %2861 = shalt.err (!%p2858_p4)
}
 0x56a   :  { %s2862_s5 = scalar_lea.hbm %s3269_s4, 256 }
 0x56b   :  { %p2863_p5 = scmp.ne.s32.totalorder %s3269_s4, %s2862_s5  ;;  %p2866_p6 = scmp.lt.u32.totalorder %s2862_s5, %s3269_s4 }
 0x56d   :  { %p2868_p7 = pnand %p2866_p6, %p2863_p5 }
 0x56f   :  { %2871 = shalt.err (!%p2868_p7)
}
 0x570   :  { %s2877_s10 = smov 128   ;;  %s2878_s11 = smov 8  }
 0x571   :  { %2281 = dma.vmem_to_hbm [thread:$0]  %s2276_s29, 256, %s3269_s4, [#allocation3], %s2877_s10, %s2877_s10, %s2878_s11  }
 0x572   :  { %2872 = dma.done.wait [#allocation3], 256  }
 0x573   :  { %2873 = vsyncadd [#allocation3], 4294967040 }
 0x574   :  { %2285 = vsyncpa [#allocation3], 1 }

</bundles_post_ra>
